<compile_context>
chip_gen: v5e
topology: v5e:2x2
jax: 0.10.0
libtpu: 0.0.40
codegen_flags: <defaults>
</compile_context>

<pallas_src>
import functools

import jax
import jax.numpy as jnp
from jax.experimental import pallas as pl
from jax.experimental.pallas import tpu as pltpu

PERIODS = 4      # stands in for `p = int(sys.argv[1])`
NUM_NODES = 8
OUT_CH = 4       # A3TGCN out_channels
FINAL = 12       # Linear(4, 12)
LANES = 128      # lane-dense padded width for the packed slab / output

# Packed-parameter slab row layout (shape (24, 128), zero padded):
#   row 0 , cols 0:8   : u_zr = [wz@lzx | wr@lrx]              (input-path weights, z|r)
#   row 1 , cols 0:8   : c_zr = [bz@lzx+lzb | br@lrx+lrb]      (folded biases, z|r)
#   row 2 , cols 0:4   : u_h  = wh@lhx
#   row 3 , cols 0:4   : c_h  = bh@lhx + lhb
#   row 4 , cols 0:P   : softmax(att)                          (attention probs)
#   row 5 , cols 0:12  : lob  (final bias, lane-padded)
#   rows 8:12, cols 0:8 : W_zr = [lzh | lrh]                   (recurrent weights, z|r)
#   rows 8:12, cols 8:12: lhh                                  (recurrent weight, h)
#   rows 16:20, cols 0:12: low (final Linear(4,12) weight, lane-padded)


def _net_kernel(a_ref, x_ref, w_ref, out_ref):
    """Whole forward pass for one small graph, everything resident in VMEM."""
    A = a_ref[...]                       # (N, N) normalized adjacency (with self loops)
    X = x_ref[...]                       # (N, P) per-period scalar node features
    W = w_ref[...]                       # (24, 128) packed, pre-folded parameters

    # Graph conv hoisted out of the recurrence: one MXU push for all periods/gates.
    AX = jnp.dot(A, X, preferred_element_type=jnp.float32)      # (N, P)

    u_zr = W[0:1, 0:2 * OUT_CH]                  # (1, 8)
    c_zr = W[1:2, 0:2 * OUT_CH]                  # (1, 8)
    u_h = W[2:3, 0:OUT_CH]                       # (1, 4)
    c_h = W[3:4, 0:OUT_CH]                       # (1, 4)
    probs = W[4:5, :]                            # (1, 128); cols 0:P valid
    lob = W[5:6, :]                              # (1, 128) lane-padded final bias
    W_zr = W[8:12, 0:2 * OUT_CH]                 # (4, 8)  fused [lzh | lrh]
    lhh = W[8:12, 2 * OUT_CH:3 * OUT_CH]         # (4, 4)
    low = W[16:20, :]                            # (4, 128) lane-padded final weight

    N = A.shape[0]
    P = X.shape[1]

    H = jnp.zeros((N, OUT_CH), jnp.float32)
    H_att = jnp.zeros((N, OUT_CH), jnp.float32)

    # periods is small & static -> fully unrolled recurrent loop.
    # Per step: 2 MXU matmuls (fused z|r, and h) + VPU broadcast-FMAs.
    for t in range(P):
        AXt = AX[:, t:t + 1]                                     # (N, 1)

        # Fused Z|R gates: input path is a VPU FMA, hidden path is one matmul.
        ZR = jax.nn.sigmoid(
            AXt * u_zr + c_zr
            + jnp.dot(H, W_zr, preferred_element_type=jnp.float32))   # (N, 8)
        Z = ZR[:, :OUT_CH]
        R = ZR[:, OUT_CH:]

        H_tilde = jnp.tanh(
            AXt * u_h + c_h
            + jnp.dot(H * R, lhh, preferred_element_type=jnp.float32))

        H = Z * H + (1.0 - Z) * H_tilde
        H_att = H_att + probs[:, t:t + 1] * H                    # attention-weighted sum

    # Final Linear(4, 12), lane-padded to 128 -> unmasked store; wrapper slices :12.
    out_ref[...] = (jnp.dot(H_att, low, preferred_element_type=jnp.float32) + lob)


def build_normalized_adjacency(edge_index, num_nodes):
    """Dense A_hat = D^-1/2 (A + I) D^-1/2, matching GCNConv's gcn_norm (glue).

    Note: duplicate edges in edge_index accumulate with multiplicity; pass a
    deduplicated edge_index (as gcn_norm assumes).
    """
    src, dst = edge_index[0], edge_index[1]
    A = jnp.zeros((num_nodes, num_nodes), jnp.float32)
    A = A.at[dst, src].add(1.0)
    A = A + jnp.eye(num_nodes, dtype=jnp.float32)
    deg = A.sum(axis=1)
    dinv = jnp.where(deg > 0, 1.0 / jnp.sqrt(deg), 0.0)
    return dinv[:, None] * A * dinv[None, :]


def _fold_params(params, periods):
    """Constant-fold GCN weights into the gate linears and pack into one slab.

    Valid only because in_channels == 1:
      (A@(Xt*wg) + bg) @ lgx == (A@Xt) * (wg@lgx) + (bg@lgx)
    """
    probs = jax.nn.softmax(params["att"], axis=-1)               # (1, P)

    u_z = params["wz"] @ params["lzx"]
    u_r = params["wr"] @ params["lrx"]
    u_h = params["wh"] @ params["lhx"]
    c_z = params["bz"] @ params["lzx"] + params["lzb"]
    c_r = params["br"] @ params["lrx"] + params["lrb"]
    c_h = params["bh"] @ params["lhx"] + params["lhb"]

    u_zr = jnp.concatenate([u_z, u_r], axis=1)                   # (1, 8)
    c_zr = jnp.concatenate([c_z, c_r], axis=1)                   # (1, 8)
    W_zr = jnp.concatenate([params["lzh"], params["lrh"]], axis=1)  # (4, 8)

    slab = jnp.zeros((24, LANES), jnp.float32)
    slab = slab.at[0, 0:2 * OUT_CH].set(u_zr[0])
    slab = slab.at[1, 0:2 * OUT_CH].set(c_zr[0])
    slab = slab.at[2, 0:OUT_CH].set(u_h[0])
    slab = slab.at[3, 0:OUT_CH].set(c_h[0])
    slab = slab.at[4, 0:periods].set(probs[0])
    slab = slab.at[5, 0:FINAL].set(params["lob"][0])
    slab = slab.at[8:12, 0:2 * OUT_CH].set(W_zr)
    slab = slab.at[8:12, 2 * OUT_CH:3 * OUT_CH].set(params["lhh"])
    slab = slab.at[16:20, 0:FINAL].set(params["low"])
    return slab


@functools.partial(jax.jit, static_argnames=("num_nodes", "periods"))
def net_forward(x, edge_index, params, num_nodes, periods):
    """x: [num_nodes, 1, periods] (PyTorch layout), edge_index: [2, E] int32."""
    A_hat = build_normalized_adjacency(edge_index, num_nodes)
    X = x[:, 0, :].astype(jnp.float32)               # squeeze in_channels=1 -> (N, P)
    slab = _fold_params(params, periods)             # all folds / softmax off the kernel

    vmem = pl.BlockSpec(memory_space=pltpu.MemorySpace.VMEM)
    out_padded = pl.pallas_call(
        _net_kernel,
        out_shape=jax.ShapeDtypeStruct((num_nodes, LANES), jnp.float32),
        in_specs=[vmem, vmem, vmem],                 # 3 DMAs: A_hat, X, packed slab
        out_specs=vmem,                              # lane-dense (N, 128) store
    )(A_hat, X, slab)
    return out_padded[:, :FINAL]


def net_reference(x, edge_index, params, num_nodes):
    """Pure-JAX reference with the original (unfused) A3TGCN math, for checking."""
    A = build_normalized_adjacency(edge_index, num_nodes)
    X = x[:, 0, :].astype(jnp.float32)
    probs = jax.nn.softmax(params["att"], axis=-1)
    H = jnp.zeros((num_nodes, OUT_CH), jnp.float32)
    H_acc = jnp.zeros((num_nodes, OUT_CH), jnp.float32)
    for t in range(X.shape[1]):
        Xt = X[:, t:t + 1]
        cz = A @ (Xt * params["wz"]) + params["bz"]
        cr = A @ (Xt * params["wr"]) + params["br"]
        ch = A @ (Xt * params["wh"]) + params["bh"]
        Z = jax.nn.sigmoid(cz @ params["lzx"] + H @ params["lzh"] + params["lzb"])
        R = jax.nn.sigmoid(cr @ params["lrx"] + H @ params["lrh"] + params["lrb"])
        Ht = jnp.tanh(ch @ params["lhx"] + (H * R) @ params["lhh"] + params["lhb"])
        H = Z * H + (1.0 - Z) * Ht
        H_acc = H_acc + probs[:, t:t + 1] * H
    return H_acc @ params["low"] + params["lob"]


def init_params(key, periods):
    """Deterministic synthetic parameters with the same shapes as the PyTorch module."""
    ks = jax.random.split(key, 16)
    s = 0.1

    def rnd(k, shape):
        return (s * jax.random.normal(k, shape)).astype(jnp.float32)

    return {
        # GCNConv weights (in=1 -> out=4) and biases for z / r / h gates
        "wz": rnd(ks[0], (1, OUT_CH)), "bz": rnd(ks[1], (1, OUT_CH)),
        "wr": rnd(ks[2], (1, OUT_CH)), "br": rnd(ks[3], (1, OUT_CH)),
        "wh": rnd(ks[4], (1, OUT_CH)), "bh": rnd(ks[5], (1, OUT_CH)),
        # Linear(2*out, out) per gate, split into [conv-part | hidden-part]
        "lzx": rnd(ks[6], (OUT_CH, OUT_CH)), "lzh": rnd(ks[7], (OUT_CH, OUT_CH)),
        "lzb": rnd(ks[8], (1, OUT_CH)),
        "lrx": rnd(ks[9], (OUT_CH, OUT_CH)), "lrh": rnd(ks[10], (OUT_CH, OUT_CH)),
        "lrb": rnd(ks[11], (1, OUT_CH)),
        "lhx": rnd(ks[12], (OUT_CH, OUT_CH)), "lhh": rnd(ks[13], (OUT_CH, OUT_CH)),
        "lhb": rnd(ks[14], (1, OUT_CH)),
        # A3TGCN per-period attention logits
        "att": rnd(ks[15], (1, periods)),
        # Final Linear(4, 12): weight stored already transposed to (in, out)
        "low": (s * jax.random.normal(jax.random.fold_in(key, 100),
                                      (OUT_CH, FINAL))).astype(jnp.float32),
        "lob": (s * jax.random.normal(jax.random.fold_in(key, 101),
                                      (1, FINAL))).astype(jnp.float32),
    }


if __name__ == "__main__":
    key = jax.random.PRNGKey(0)
    k_x, k_p = jax.random.split(key)

    # Small synthetic temporal graph signal: [num_nodes, in_channels=1, periods]
    x = jax.random.normal(k_x, (NUM_NODES, 1, PERIODS), dtype=jnp.float32)

    # Undirected ring graph as edge_index [2, 2*N] (no duplicate edges)
    idx = jnp.arange(NUM_NODES, dtype=jnp.int32)
    nxt = (idx + 1) % NUM_NODES
    edge_index = jnp.stack(
        [jnp.concatenate([idx, nxt]), jnp.concatenate([nxt, idx])], axis=0)

    params = init_params(k_p, PERIODS)

    out = net_forward(x, edge_index, params, num_nodes=NUM_NODES, periods=PERIODS)
    out = jax.block_until_ready(out)

    ref = net_reference(x, edge_index, params, NUM_NODES)

    assert out.shape == (NUM_NODES, FINAL)
    assert jnp.all(jnp.isfinite(out))
    assert jnp.allclose(out, ref, rtol=1e-4, atol=1e-5)
    print("KERNEL_OK")
</pallas_src>

<mosaic_0001>
module attributes {stable_mosaic.version = 11 : i64} {
  func.func @_net_kernel(%arg0: memref<8x8xf32, #tpu.memory_space<vmem>>, %arg1: memref<8x4xf32, #tpu.memory_space<vmem>>, %arg2: memref<24x128xf32, #tpu.memory_space<vmem>>, %arg3: memref<8x128xf32, #tpu.memory_space<vmem>>) attributes {dimension_semantics = [], scalar_prefetch = 0 : i64, scratch_operands = 0 : i64, tpu.core_type = #tpu.core_type<tc>} {
    %c0 = arith.constant 0 : index
    %c0_0 = arith.constant 0 : index
    %0 = vector.load %arg0[%c0, %c0_0] : memref<8x8xf32, #tpu.memory_space<vmem>>, vector<8x8xf32>
    %c0_1 = arith.constant 0 : index
    %c0_2 = arith.constant 0 : index
    %1 = vector.load %arg1[%c0_1, %c0_2] : memref<8x4xf32, #tpu.memory_space<vmem>>, vector<8x4xf32>
    %c0_3 = arith.constant 0 : index
    %c0_4 = arith.constant 0 : index
    %2 = vector.load %arg2[%c0_3, %c0_4] : memref<24x128xf32, #tpu.memory_space<vmem>>, vector<24x128xf32>
    %cst = arith.constant dense<0.000000e+00> : vector<8x4xf32>
    %3 = tpu.matmul %0, %1, %cst {dimension_numbers = #tpu.dot_dimension_numbers<[1], [0], [0], [1], [0, 0, 1, 1], [], []>} : vector<8x8xf32>, vector<8x4xf32>, vector<8x4xf32> -> vector<8x4xf32>
    %4 = vector.extract_strided_slice %2 {offsets = [0, 0], sizes = [1, 8], strides = [1, 1]} : vector<24x128xf32> to vector<1x8xf32>
    %5 = vector.extract_strided_slice %2 {offsets = [1, 0], sizes = [1, 8], strides = [1, 1]} : vector<24x128xf32> to vector<1x8xf32>
    %6 = vector.extract_strided_slice %2 {offsets = [2, 0], sizes = [1, 4], strides = [1, 1]} : vector<24x128xf32> to vector<1x4xf32>
    %7 = vector.extract_strided_slice %2 {offsets = [3, 0], sizes = [1, 4], strides = [1, 1]} : vector<24x128xf32> to vector<1x4xf32>
    %8 = vector.extract_strided_slice %2 {offsets = [4, 0], sizes = [1, 128], strides = [1, 1]} : vector<24x128xf32> to vector<1x128xf32>
    %9 = vector.extract_strided_slice %2 {offsets = [5, 0], sizes = [1, 128], strides = [1, 1]} : vector<24x128xf32> to vector<1x128xf32>
    %10 = vector.extract_strided_slice %2 {offsets = [8, 0], sizes = [4, 8], strides = [1, 1]} : vector<24x128xf32> to vector<4x8xf32>
    %11 = vector.extract_strided_slice %2 {offsets = [8, 8], sizes = [4, 4], strides = [1, 1]} : vector<24x128xf32> to vector<4x4xf32>
    %12 = vector.extract_strided_slice %2 {offsets = [16, 0], sizes = [4, 128], strides = [1, 1]} : vector<24x128xf32> to vector<4x128xf32>
    %cst_5 = arith.constant 0.000000e+00 : f32
    %13 = vector.broadcast %cst_5 : f32 to vector<8x4xf32>
    %cst_6 = arith.constant 0.000000e+00 : f32
    %14 = vector.broadcast %cst_6 : f32 to vector<8x4xf32>
    %15 = vector.extract_strided_slice %3 {offsets = [0, 0], sizes = [8, 1], strides = [1, 1]} : vector<8x4xf32> to vector<8x1xf32>
    %16 = vector.broadcast %15 : vector<8x1xf32> to vector<8x8xf32>
    %17 = vector.broadcast %4 : vector<1x8xf32> to vector<8x8xf32>
    %18 = arith.mulf %16, %17 : vector<8x8xf32>
    %19 = vector.broadcast %5 : vector<1x8xf32> to vector<8x8xf32>
    %20 = arith.addf %18, %19 : vector<8x8xf32>
    %cst_7 = arith.constant dense<0.000000e+00> : vector<8x8xf32>
    %21 = tpu.matmul %13, %10, %cst_7 {dimension_numbers = #tpu.dot_dimension_numbers<[1], [0], [0], [1], [0, 0, 1, 1], [], []>} : vector<8x4xf32>, vector<4x8xf32>, vector<8x8xf32> -> vector<8x8xf32>
    %22 = arith.addf %20, %21 : vector<8x8xf32>
    %23 = arith.negf %22 : vector<8x8xf32>
    %24 = math.exp %23 : vector<8x8xf32>
    %cst_8 = arith.constant 1.000000e+00 : f32
    %25 = vector.broadcast %cst_8 : f32 to vector<8x8xf32>
    %26 = arith.addf %25, %24 : vector<8x8xf32>
    %27 = arith.divf %25, %26 : vector<8x8xf32>
    %28 = vector.extract_strided_slice %27 {offsets = [0, 0], sizes = [8, 4], strides = [1, 1]} : vector<8x8xf32> to vector<8x4xf32>
    %29 = vector.extract_strided_slice %27 {offsets = [0, 4], sizes = [8, 4], strides = [1, 1]} : vector<8x8xf32> to vector<8x4xf32>
    %30 = vector.broadcast %15 : vector<8x1xf32> to vector<8x4xf32>
    %31 = vector.broadcast %6 : vector<1x4xf32> to vector<8x4xf32>
    %32 = arith.mulf %30, %31 : vector<8x4xf32>
    %33 = vector.broadcast %7 : vector<1x4xf32> to vector<8x4xf32>
    %34 = arith.addf %32, %33 : vector<8x4xf32>
    %35 = arith.mulf %13, %29 : vector<8x4xf32>
    %cst_9 = arith.constant dense<0.000000e+00> : vector<8x4xf32>
    %36 = tpu.matmul %35, %11, %cst_9 {dimension_numbers = #tpu.dot_dimension_numbers<[1], [0], [0], [1], [0, 0, 1, 1], [], []>} : vector<8x4xf32>, vector<4x4xf32>, vector<8x4xf32> -> vector<8x4xf32>
    %37 = arith.addf %34, %36 : vector<8x4xf32>
    %38 = math.tanh %37 : vector<8x4xf32>
    %39 = arith.mulf %28, %13 : vector<8x4xf32>
    %cst_10 = arith.constant 1.000000e+00 : f32
    %40 = vector.broadcast %cst_10 : f32 to vector<8x4xf32>
    %41 = arith.subf %40, %28 : vector<8x4xf32>
    %42 = arith.mulf %41, %38 : vector<8x4xf32>
    %43 = arith.addf %39, %42 : vector<8x4xf32>
    %44 = vector.extract_strided_slice %8 {offsets = [0, 0], sizes = [1, 1], strides = [1, 1]} : vector<1x128xf32> to vector<1x1xf32>
    %45 = vector.broadcast %44 : vector<1x1xf32> to vector<8x4xf32>
    %46 = arith.mulf %45, %43 : vector<8x4xf32>
    %47 = arith.addf %14, %46 : vector<8x4xf32>
    %48 = vector.extract_strided_slice %3 {offsets = [0, 1], sizes = [8, 1], strides = [1, 1]} : vector<8x4xf32> to vector<8x1xf32>
    %49 = vector.broadcast %48 : vector<8x1xf32> to vector<8x8xf32>
    %50 = vector.broadcast %4 : vector<1x8xf32> to vector<8x8xf32>
    %51 = arith.mulf %49, %50 : vector<8x8xf32>
    %52 = vector.broadcast %5 : vector<1x8xf32> to vector<8x8xf32>
    %53 = arith.addf %51, %52 : vector<8x8xf32>
    %cst_11 = arith.constant dense<0.000000e+00> : vector<8x8xf32>
    %54 = tpu.matmul %43, %10, %cst_11 {dimension_numbers = #tpu.dot_dimension_numbers<[1], [0], [0], [1], [0, 0, 1, 1], [], []>} : vector<8x4xf32>, vector<4x8xf32>, vector<8x8xf32> -> vector<8x8xf32>
    %55 = arith.addf %53, %54 : vector<8x8xf32>
    %56 = arith.negf %55 : vector<8x8xf32>
    %57 = math.exp %56 : vector<8x8xf32>
    %cst_12 = arith.constant 1.000000e+00 : f32
    %58 = vector.broadcast %cst_12 : f32 to vector<8x8xf32>
    %59 = arith.addf %58, %57 : vector<8x8xf32>
    %60 = arith.divf %58, %59 : vector<8x8xf32>
    %61 = vector.extract_strided_slice %60 {offsets = [0, 0], sizes = [8, 4], strides = [1, 1]} : vector<8x8xf32> to vector<8x4xf32>
    %62 = vector.extract_strided_slice %60 {offsets = [0, 4], sizes = [8, 4], strides = [1, 1]} : vector<8x8xf32> to vector<8x4xf32>
    %63 = vector.broadcast %48 : vector<8x1xf32> to vector<8x4xf32>
    %64 = vector.broadcast %6 : vector<1x4xf32> to vector<8x4xf32>
    %65 = arith.mulf %63, %64 : vector<8x4xf32>
    %66 = vector.broadcast %7 : vector<1x4xf32> to vector<8x4xf32>
    %67 = arith.addf %65, %66 : vector<8x4xf32>
    %68 = arith.mulf %43, %62 : vector<8x4xf32>
    %cst_13 = arith.constant dense<0.000000e+00> : vector<8x4xf32>
    %69 = tpu.matmul %68, %11, %cst_13 {dimension_numbers = #tpu.dot_dimension_numbers<[1], [0], [0], [1], [0, 0, 1, 1], [], []>} : vector<8x4xf32>, vector<4x4xf32>, vector<8x4xf32> -> vector<8x4xf32>
    %70 = arith.addf %67, %69 : vector<8x4xf32>
    %71 = math.tanh %70 : vector<8x4xf32>
    %72 = arith.mulf %61, %43 : vector<8x4xf32>
    %cst_14 = arith.constant 1.000000e+00 : f32
    %73 = vector.broadcast %cst_14 : f32 to vector<8x4xf32>
    %74 = arith.subf %73, %61 : vector<8x4xf32>
    %75 = arith.mulf %74, %71 : vector<8x4xf32>
    %76 = arith.addf %72, %75 : vector<8x4xf32>
    %77 = vector.extract_strided_slice %8 {offsets = [0, 1], sizes = [1, 1], strides = [1, 1]} : vector<1x128xf32> to vector<1x1xf32>
    %78 = vector.broadcast %77 : vector<1x1xf32> to vector<8x4xf32>
    %79 = arith.mulf %78, %76 : vector<8x4xf32>
    %80 = arith.addf %47, %79 : vector<8x4xf32>
    %81 = vector.extract_strided_slice %3 {offsets = [0, 2], sizes = [8, 1], strides = [1, 1]} : vector<8x4xf32> to vector<8x1xf32>
    %82 = vector.broadcast %81 : vector<8x1xf32> to vector<8x8xf32>
    %83 = vector.broadcast %4 : vector<1x8xf32> to vector<8x8xf32>
    %84 = arith.mulf %82, %83 : vector<8x8xf32>
    %85 = vector.broadcast %5 : vector<1x8xf32> to vector<8x8xf32>
    %86 = arith.addf %84, %85 : vector<8x8xf32>
    %cst_15 = arith.constant dense<0.000000e+00> : vector<8x8xf32>
    %87 = tpu.matmul %76, %10, %cst_15 {dimension_numbers = #tpu.dot_dimension_numbers<[1], [0], [0], [1], [0, 0, 1, 1], [], []>} : vector<8x4xf32>, vector<4x8xf32>, vector<8x8xf32> -> vector<8x8xf32>
    %88 = arith.addf %86, %87 : vector<8x8xf32>
    %89 = arith.negf %88 : vector<8x8xf32>
    %90 = math.exp %89 : vector<8x8xf32>
    %cst_16 = arith.constant 1.000000e+00 : f32
    %91 = vector.broadcast %cst_16 : f32 to vector<8x8xf32>
    %92 = arith.addf %91, %90 : vector<8x8xf32>
    %93 = arith.divf %91, %92 : vector<8x8xf32>
    %94 = vector.extract_strided_slice %93 {offsets = [0, 0], sizes = [8, 4], strides = [1, 1]} : vector<8x8xf32> to vector<8x4xf32>
    %95 = vector.extract_strided_slice %93 {offsets = [0, 4], sizes = [8, 4], strides = [1, 1]} : vector<8x8xf32> to vector<8x4xf32>
    %96 = vector.broadcast %81 : vector<8x1xf32> to vector<8x4xf32>
    %97 = vector.broadcast %6 : vector<1x4xf32> to vector<8x4xf32>
    %98 = arith.mulf %96, %97 : vector<8x4xf32>
    %99 = vector.broadcast %7 : vector<1x4xf32> to vector<8x4xf32>
    %100 = arith.addf %98, %99 : vector<8x4xf32>
    %101 = arith.mulf %76, %95 : vector<8x4xf32>
    %cst_17 = arith.constant dense<0.000000e+00> : vector<8x4xf32>
    %102 = tpu.matmul %101, %11, %cst_17 {dimension_numbers = #tpu.dot_dimension_numbers<[1], [0], [0], [1], [0, 0, 1, 1], [], []>} : vector<8x4xf32>, vector<4x4xf32>, vector<8x4xf32> -> vector<8x4xf32>
    %103 = arith.addf %100, %102 : vector<8x4xf32>
    %104 = math.tanh %103 : vector<8x4xf32>
    %105 = arith.mulf %94, %76 : vector<8x4xf32>
    %cst_18 = arith.constant 1.000000e+00 : f32
    %106 = vector.broadcast %cst_18 : f32 to vector<8x4xf32>
    %107 = arith.subf %106, %94 : vector<8x4xf32>
    %108 = arith.mulf %107, %104 : vector<8x4xf32>
    %109 = arith.addf %105, %108 : vector<8x4xf32>
    %110 = vector.extract_strided_slice %8 {offsets = [0, 2], sizes = [1, 1], strides = [1, 1]} : vector<1x128xf32> to vector<1x1xf32>
    %111 = vector.broadcast %110 : vector<1x1xf32> to vector<8x4xf32>
    %112 = arith.mulf %111, %109 : vector<8x4xf32>
    %113 = arith.addf %80, %112 : vector<8x4xf32>
    %114 = vector.extract_strided_slice %3 {offsets = [0, 3], sizes = [8, 1], strides = [1, 1]} : vector<8x4xf32> to vector<8x1xf32>
    %115 = vector.broadcast %114 : vector<8x1xf32> to vector<8x8xf32>
    %116 = vector.broadcast %4 : vector<1x8xf32> to vector<8x8xf32>
    %117 = arith.mulf %115, %116 : vector<8x8xf32>
    %118 = vector.broadcast %5 : vector<1x8xf32> to vector<8x8xf32>
    %119 = arith.addf %117, %118 : vector<8x8xf32>
    %cst_19 = arith.constant dense<0.000000e+00> : vector<8x8xf32>
    %120 = tpu.matmul %109, %10, %cst_19 {dimension_numbers = #tpu.dot_dimension_numbers<[1], [0], [0], [1], [0, 0, 1, 1], [], []>} : vector<8x4xf32>, vector<4x8xf32>, vector<8x8xf32> -> vector<8x8xf32>
    %121 = arith.addf %119, %120 : vector<8x8xf32>
    %122 = arith.negf %121 : vector<8x8xf32>
    %123 = math.exp %122 : vector<8x8xf32>
    %cst_20 = arith.constant 1.000000e+00 : f32
    %124 = vector.broadcast %cst_20 : f32 to vector<8x8xf32>
    %125 = arith.addf %124, %123 : vector<8x8xf32>
    %126 = arith.divf %124, %125 : vector<8x8xf32>
    %127 = vector.extract_strided_slice %126 {offsets = [0, 0], sizes = [8, 4], strides = [1, 1]} : vector<8x8xf32> to vector<8x4xf32>
    %128 = vector.extract_strided_slice %126 {offsets = [0, 4], sizes = [8, 4], strides = [1, 1]} : vector<8x8xf32> to vector<8x4xf32>
    %129 = vector.broadcast %114 : vector<8x1xf32> to vector<8x4xf32>
    %130 = vector.broadcast %6 : vector<1x4xf32> to vector<8x4xf32>
    %131 = arith.mulf %129, %130 : vector<8x4xf32>
    %132 = vector.broadcast %7 : vector<1x4xf32> to vector<8x4xf32>
    %133 = arith.addf %131, %132 : vector<8x4xf32>
    %134 = arith.mulf %109, %128 : vector<8x4xf32>
    %cst_21 = arith.constant dense<0.000000e+00> : vector<8x4xf32>
    %135 = tpu.matmul %134, %11, %cst_21 {dimension_numbers = #tpu.dot_dimension_numbers<[1], [0], [0], [1], [0, 0, 1, 1], [], []>} : vector<8x4xf32>, vector<4x4xf32>, vector<8x4xf32> -> vector<8x4xf32>
    %136 = arith.addf %133, %135 : vector<8x4xf32>
    %137 = math.tanh %136 : vector<8x4xf32>
    %138 = arith.mulf %127, %109 : vector<8x4xf32>
    %cst_22 = arith.constant 1.000000e+00 : f32
    %139 = vector.broadcast %cst_22 : f32 to vector<8x4xf32>
    %140 = arith.subf %139, %127 : vector<8x4xf32>
    %141 = arith.mulf %140, %137 : vector<8x4xf32>
    %142 = arith.addf %138, %141 : vector<8x4xf32>
    %143 = vector.extract_strided_slice %8 {offsets = [0, 3], sizes = [1, 1], strides = [1, 1]} : vector<1x128xf32> to vector<1x1xf32>
    %144 = vector.broadcast %143 : vector<1x1xf32> to vector<8x4xf32>
    %145 = arith.mulf %144, %142 : vector<8x4xf32>
    %146 = arith.addf %113, %145 : vector<8x4xf32>
    %cst_23 = arith.constant dense<0.000000e+00> : vector<8x128xf32>
    %147 = tpu.matmul %146, %12, %cst_23 {dimension_numbers = #tpu.dot_dimension_numbers<[1], [0], [0], [1], [0, 0, 1, 1], [], []>} : vector<8x4xf32>, vector<4x128xf32>, vector<8x128xf32> -> vector<8x128xf32>
    %148 = vector.broadcast %9 : vector<1x128xf32> to vector<8x128xf32>
    %149 = arith.addf %147, %148 : vector<8x128xf32>
    %c0_24 = arith.constant 0 : index
    %c0_25 = arith.constant 0 : index
    %150 = vector.load %arg3[%c0_24, %c0_25] : memref<8x128xf32, #tpu.memory_space<vmem>>, vector<8x128xf32>
    tpu.vector_store %arg3[%c0_24, %c0_25], %149 {strides = array<i32>} : memref<8x128xf32, #tpu.memory_space<vmem>>, vector<8x128xf32>,
    return
  }
}

</mosaic_0001>

<bundles_post_ra>
// kernel: net_forward.1
= control target key start
LH: loop header
LB: loop body
LE: loop exit
PB: predicated region body
PF: predicated region fallthrough
CT: control target
= control target key end

     0   :  { %vm20_vm0 = vcmask 64512   ;;  %vm57_vm1 = vcmask 1043456   ;;  %s689_s0 = inlined_call_operand.vmem [shape: f32[8,8], index: 0, kind: input, shape index: {}]   ;;  %s690_s1 = inlined_call_operand.vmem [shape: f32[8,4], index: 1, kind: input, shape index: {}]   ;;  %s691_s2 = inlined_call_operand.vmem [shape: f32[24,128], index: 2, kind: input, shape index: {}]   ;;  %s692_s3 = inlined_call_operand.hbm [shape: f32[8,128], index: 3, kind: output, shape index: {}]  }
   0x1   :  { %v16_v0 = vld [vmem:[%s690_s1] sm:$0xff]  ;;  %v18_v2 = vld [vmem:[%s691_s2 + $0x8] sm:$0xff] }
   0x2   :  { %v15_v1 = vld [vmem:[%s689_s0] sm:$0xff]  ;;  %39 = vmatpush.msra.mxu0 %v16_v0  ;;  %468 = vmatpush.msk.msra.mxu1 %vm57_vm1, %v18_v2 }
   0x3   :  { %8 = vsyncpa [#allocation3], 0  ;;  %467 = vmatmul.msk.f32.vlgmr.msra.gmra.mxu0 %vm20_vm0, %v15_v1  ;;  %v563_v3 = vmov 0.0   ;;  %v564_v4 = vmov 0   ;;  %472 = vmatpush.msk.msra.mxu3 %vm57_vm1, %v18_v2  ;;  %s565_s0 = smov 120   ;;  %v613_v6 = vld [vmem:[%s691_s2] sm:$0xff] }
   0x4   :  { %77 = vmatmul.f32.vlgmr.msra.gmra.mxu1 %v563_v3  ;;  %508 = vset.pattern.permute.xlu0 %v564_v4  ;;  %v616_v7 = vperm.slane %v613_v6, 0  ;;  %v619_v8 = vperm.slane %v613_v6, 1  ;;  %v566_v14 = vmov 1   ;;  %v567_v16 = vmov 3   ;;  %s568_s19 = smov 124   ;;  %s570_s20 = smov 126  }
   0x5   :  { %477 = vmatpush.msk.msrb.mxu1 %vm57_vm1, %v18_v2  ;;  %482 = vmatpush.msk.msrb.mxu3 %vm57_vm1, %v18_v2  ;;  %v631_v31 = vrot.slane %v613_v6, 4  ;;  %vm53_vm6 = vcmask 31744   ;;  %v636_v33 = vperm.slane %v613_v6, 2  ;;  %v640_v35 = vperm.slane %v613_v6, 3  ;;  %s571_s21 = smov 127   ;;  %s572_s22 = smov 125  }
   0x6   :  { %509 = vset.pattern.permute.xlu1 %v566_v14  ;;  %v569_v47 = vmov 2   ;;  %s458_s5 = sshll.u32 %s692_s3, 4  ;;  %s459_s5 = int_to_ptr.hbm [resolvable:$true] %s458_s5 }
   0x7   :  { %489 = vpush %v631_v31  ;;  %510 = vset.pattern.permute.xlu2 %v569_v47 }
  0x38   :  { %s490_s25 = spop %489 }
  0x80   :  { %v607_v5 = vpop.f32.mrf.mxu0 }
  0x81   :  { %46 = vperm.xlu0 %508, %v607_v5   ;;  %v78_v11 = vpop.f32.mrf.mxu1 }
  0x89   :  { %109 = vrot.lane.b32.xlu0 %v18_v2, %s565_s0 }
  0x8a   :  { %512 = vset.pattern.permute.xlu0 %v567_v16 }
  0xf3   :  { %v47_v9 = vpop.permute.xlu0 %46 }
  0xf4   :  { %v50_v10 = vmul.f32 %v616_v7, %v47_v9  ;;  %v102_v34 = vmul.f32 %v636_v33, %v47_v9 }
  0xf6   :  { %v52_v12 = vadd.f32 %v619_v8, %v50_v10  ;;  %v104_v36 = vadd.f32 %v640_v35, %v102_v34 }
  0xf8   :  { %v81_v13 = vadd.f32 %v78_v11, %v52_v12 }
  0xfa   :  { %v469_v15 = vmul.f32 -1.442695, %v81_v13 }
  0xfb   :  { %v110_v19 = vpop.permute.xlu0 %109 }
  0xfc   :  { %513 = vpow2.f32 %v469_v15  ;;  %470 = vmatpush.msk.msra.mxu2 %vm57_vm1, %v110_v19  ;;  %475 = vmatpush.msk.msrb.mxu0 %vm57_vm1, %v110_v19 }
  0xfe   :  { %480 = vmatpush.msk.msrb.mxu2 %vm57_vm1, %v110_v19  ;;  %485 = vmatpush.msk.msra.mxu0 %vm57_vm1, %v110_v19 }
 0x102   :  { %v514_v17 = vpop.eup %513 }
 0x103   :  { %v85_v18 = vadd.f32 1.0, %v514_v17 }
 0x105   :  { %515 = vrcp.f32 %v85_v18  ;;  %v97_v23 = vand.u32 2147483648, %v85_v18  ;;  %v95_v25 = vand.u32 2147483647, %v85_v18  ;;  %vm91_vm3 = vweird.f32 %v85_v18 }
 0x107   :  { %v98_v27 = vor.u32 1.1754944e-38, %v97_v23  ;;  %vm96_vm5 = vcmp.eq.f32.partialorder %v95_v25, 8.507059e+37 }
 0x10b   :  { %v516_v20 = vpop.eup %515 }
 0x10c   :  { %v87_v21 = vmul.f32 %v516_v20, %v85_v18  ;;  %vm92_vm2 = vweird.f32 %v516_v20 }
 0x10d   :  { %vm93_vm4 = vmor %vm91_vm3, %vm92_vm2 }
 0x10e   :  { %v88_v22 = vsub.f32 1.0, %v87_v21 }
 0x110   :  { %v89_v24 = vmul.f32 %v516_v20, %v88_v22 }
 0x112   :  { %v90_v26 = vadd.f32 %v516_v20, %v89_v24 }
 0x114   :  { %v94_v28 = vsel %vm93_vm4, %v516_v20, %v90_v26 }
 0x115   :  { %v99_v29 = vsel %vm96_vm5, %v98_v27, %v94_v28 }
 0x116   :  { %v105_v30 = vmul.f32 0.0, %v99_v29  ;;  %v137_v39 = vsub.f32 1.0, %v99_v29 }
 0x118   :  { %107 = vrot.lane.b32.xlu1 %v105_v30, %s568_s19 }
 0x120   :  { %148 = vperm.xlu1 %509, %v607_v5  }
 0x128   :  { %511 = vset.pattern.permute.xlu1 %v567_v16 }
 0x129   :  { %332 = vperm.xlu1 %511, %v607_v5  }
 0x131   :  { %324 = vrot.lane.b32.xlu1 %v631_v31, %s570_s20 }
 0x18a   :  { %v108_v32 = vpop.permute.xlu1 %107 }
 0x18b   :  { %471 = vmatmul.msk.f32.vlgmr.msra.gmra.mxu2 %vm53_vm6, %v108_v32 }
 0x192   :  { %v149_v43 = vpop.permute.xlu1 %148 }
 0x193   :  { %v151_v44 = vmul.f32 %v149_v43, %v616_v7  ;;  %v196_v0 = vmul.f32 %v149_v43, %v636_v33 }
 0x195   :  { %v152_v45 = vadd.f32 %v151_v44, %v619_v8  ;;  %v197_v1 = vadd.f32 %v196_v0, %v640_v35 }
 0x20e   :  { %v132_v37 = vpop.f32.mrf.mxu2 }
 0x20f   :  { %v135_v38 = vadd.f32 %v132_v37, %v104_v36  ;;  %v333_v36 = vpop.permute.xlu1 %332 }
 0x211   :  { %517 = vtanh.f32 %v135_v38 }
 0x217   :  { %v518_v40 = vpop.eup %517  ;;  %v325_v37 = vpop.permute.xlu1 %324 }
 0x218   :  { %v138_v41 = vmul.f32 %v518_v40, %v137_v39 }
 0x21a   :  { %v643_v42 = vadd.f32 %v138_v41, %v105_v30 }
 0x21c   :  { %473 = vmatmul.msk.f32.vlgmr.msra.gmra.mxu3 %vm53_vm6, %v643_v42 }
 0x29f   :  { %v173_v46 = vpop.f32.mrf.mxu3 }
 0x2a0   :  { %v176_v48 = vadd.f32 %v173_v46, %v152_v45 }
 0x2a2   :  { %v474_v49 = vmul.f32 -1.442695, %v176_v48  ;;  %v335_v48 = vmul.f32 %v333_v36, %v616_v7 }
 0x2a4   :  { %519 = vpow2.f32 %v474_v49  ;;  %v336_v49 = vadd.f32 %v335_v48, %v619_v8 }
 0x2aa   :  { %v520_v50 = vpop.eup %519 }
 0x2ab   :  { %v180_v51 = vadd.f32 1.0, %v520_v50 }
 0x2ad   :  { %521 = vrcp.f32 %v180_v51  ;;  %v192_v55 = vand.u32 2147483648, %v180_v51  ;;  %v190_v57 = vand.u32 2147483647, %v180_v51  ;;  %vm186_vm8 = vweird.f32 %v180_v51 }
 0x2af   :  { %v193_v59 = vor.u32 1.1754944e-38, %v192_v55  ;;  %vm191_vm10 = vcmp.eq.f32.partialorder %v190_v57, 8.507059e+37 }
 0x2b3   :  { %v522_v52 = vpop.eup %521 }
 0x2b4   :  { %v182_v53 = vmul.f32 %v522_v52, %v180_v51  ;;  %vm187_vm7 = vweird.f32 %v522_v52 }
 0x2b5   :  { %vm188_vm9 = vmor %vm186_vm8, %vm187_vm7 }
 0x2b6   :  { %v183_v54 = vsub.f32 1.0, %v182_v53 }
 0x2b8   :  { %v184_v56 = vmul.f32 %v522_v52, %v183_v54 }
 0x2ba   :  { %v185_v58 = vadd.f32 %v522_v52, %v184_v56 }
 0x2bc   :  { %v189_v60 = vsel %vm188_vm9, %v522_v52, %v185_v58 }
 0x2bd   :  { %v194_v61 = vsel %vm191_vm10, %v193_v59, %v189_v60 }
 0x2be   :  { %199 = vrot.lane.b32.xlu2 %v194_v61, %s568_s19  ;;  %v229_v4 = vsub.f32 1.0, %v194_v61  ;;  %v228_v10 = vmul.f32 %v194_v61, %v643_v42 }
 0x2c6   :  { %240 = vperm.xlu2 %510, %v607_v5  }
 0x318   :  { %v200_v62 = vpop.permute.xlu2 %199 }
 0x319   :  { %v202_v63 = vmul.f32 %v200_v62, %v643_v42 }
 0x31b   :  { %476 = vmatmul.msk.f32.vlgmr.msrb.gmra.mxu0 %vm53_vm6, %v202_v63 }
 0x320   :  { %v241_v5 = vpop.permute.xlu2 %240 }
 0x321   :  { %v243_v13 = vmul.f32 %v241_v5, %v616_v7  ;;  %v288_v38 = vmul.f32 %v241_v5, %v636_v33 }
 0x323   :  { %v244_v14 = vadd.f32 %v243_v13, %v619_v8  ;;  %v289_v39 = vadd.f32 %v288_v38, %v640_v35 }
 0x398   :  { %v223_v2 = vpop.f32.mrf.mxu0 }
 0x399   :  { %v226_v3 = vadd.f32 %v223_v2, %v197_v1  ;;  %v19_v2 = vld [vmem:[%s691_s2 + $0x10] sm:$0xff]  ;;  %s573_s2 = smov [#allocation2]  }
 0x39a   :  { %487 = vmatpush.msk.msra.mxu1 %vm57_vm1, %v19_v2  ;;  %s456_s29 = sshll.u32 %s573_s2, 4  ;;  %s457_s29 = int_to_ptr.vmem [resolvable:$true] %s456_s29 }
 0x39b   :  { %523 = vtanh.f32 %v226_v3  ;;  %v380_v3 = vmul.f32 %v333_v36, %v636_v33 }
 0x3a1   :  { %v524_v9 = vpop.eup %523 }
 0x3a2   :  { %v230_v11 = vmul.f32 %v524_v9, %v229_v4  ;;  %v381_v4 = vadd.f32 %v380_v3, %v640_v35 }
 0x3a4   :  { %v656_v12 = vadd.f32 %v230_v11, %v228_v10  ;;  %v143_v11 = vstv %s490_s25 }
 0x3a6   :  { %478 = vmatmul.msk.f32.vlgmr.msrb.gmra.mxu1 %vm53_vm6, %v656_v12 }
 0x423   :  { %v265_v15 = vpop.f32.mrf.mxu1 }
 0x424   :  { %v268_v16 = vadd.f32 %v265_v15, %v244_v14 }
 0x426   :  { %v479_v17 = vmul.f32 -1.442695, %v268_v16  ;;  %v145_v16 = vmul.f32 %v143_v11, %v643_v42 }
 0x428   :  { %525 = vpow2.f32 %v479_v17 }
 0x42e   :  { %v526_v18 = vpop.eup %525 }
 0x42f   :  { %v272_v19 = vadd.f32 1.0, %v526_v18 }
 0x431   :  { %527 = vrcp.f32 %v272_v19  ;;  %v284_v23 = vand.u32 2147483648, %v272_v19  ;;  %v282_v25 = vand.u32 2147483647, %v272_v19  ;;  %vm278_vm12 = vweird.f32 %v272_v19 }
 0x433   :  { %v285_v27 = vor.u32 1.1754944e-38, %v284_v23  ;;  %vm283_vm14 = vcmp.eq.f32.partialorder %v282_v25, 8.507059e+37 }
 0x437   :  { %v528_v20 = vpop.eup %527 }
 0x438   :  { %v274_v21 = vmul.f32 %v528_v20, %v272_v19  ;;  %vm279_vm11 = vweird.f32 %v528_v20 }
 0x439   :  { %vm280_vm13 = vmor %vm278_vm12, %vm279_vm11 }
 0x43a   :  { %v275_v22 = vsub.f32 1.0, %v274_v21 }
 0x43c   :  { %v276_v24 = vmul.f32 %v528_v20, %v275_v22 }
 0x43e   :  { %v277_v26 = vadd.f32 %v528_v20, %v276_v24  ;;  %v423_v24 = vperm.slane %v613_v6, 5 }
 0x440   :  { %v281_v28 = vsel %vm280_vm13, %v528_v20, %v277_v26 }
 0x441   :  { %v286_v29 = vsel %vm283_vm14, %v285_v27, %v281_v28 }
 0x442   :  { %291 = vrot.lane.b32.xlu0 %v286_v29, %s568_s19  ;;  %v321_v43 = vsub.f32 1.0, %v286_v29  ;;  %v320_v45 = vmul.f32 %v286_v29, %v656_v12 }
 0x44a   :  { %232 = vrot.lane.b32.xlu0 %v631_v31, %s571_s21 }
 0x4b4   :  { %v292_v30 = vpop.permute.xlu0 %291 }
 0x4b5   :  { %v294_v32 = vmul.f32 %v292_v30, %v656_v12 }
 0x4b7   :  { %481 = vmatmul.msk.f32.vlgmr.msrb.gmra.mxu2 %vm53_vm6, %v294_v32 }
 0x4bc   :  { %v233_v34 = vpop.permute.xlu0 %232 }
 0x4bd   :  { %491 = vpush %v233_v34 }
 0x4be   :  { %493 = vpush %v325_v37 }
 0x4ee   :  { %s492_s26 = spop %491 }
 0x4ef   :  { %s494_s27 = spop %493 }
 0x4f0   :  { %v327_v5 = vstv %s494_s27 }
 0x53a   :  { %v315_v40 = vpop.f32.mrf.mxu2 }
 0x53b   :  { %v318_v41 = vadd.f32 %v315_v40, %v289_v39 }
 0x53d   :  { %529 = vtanh.f32 %v318_v41 }
 0x543   :  { %v530_v44 = vpop.eup %529 }
 0x544   :  { %v322_v46 = vmul.f32 %v530_v44, %v321_v43 }
 0x546   :  { %v323_v47 = vadd.f32 %v322_v46, %v320_v45 }
 0x548   :  { %483 = vmatmul.msk.f32.vlgmr.msrb.gmra.mxu3 %vm53_vm6, %v323_v47  ;;  %v329_v17 = vmul.f32 %v327_v5, %v323_v47 }
 0x5cb   :  { %v357_v50 = vpop.f32.mrf.mxu3 }
 0x5cc   :  { %v360_v51 = vadd.f32 %v357_v50, %v336_v49 }
 0x5ce   :  { %v484_v52 = vmul.f32 -1.442695, %v360_v51 }
 0x5d0   :  { %531 = vpow2.f32 %v484_v52 }
 0x5d6   :  { %v532_v53 = vpop.eup %531 }
 0x5d7   :  { %v364_v54 = vadd.f32 1.0, %v532_v53 }
 0x5d9   :  { %533 = vrcp.f32 %v364_v54  ;;  %v376_v58 = vand.u32 2147483648, %v364_v54  ;;  %v374_v60 = vand.u32 2147483647, %v364_v54  ;;  %vm370_vm0 = vweird.f32 %v364_v54 }
 0x5db   :  { %v377_v7 = vor.u32 1.1754944e-38, %v376_v58  ;;  %vm375_vm3 = vcmp.eq.f32.partialorder %v374_v60, 8.507059e+37 }
 0x5df   :  { %v534_v55 = vpop.eup %533 }
 0x5e0   :  { %v366_v56 = vmul.f32 %v534_v55, %v364_v54  ;;  %vm371_vm15 = vweird.f32 %v534_v55 }
 0x5e1   :  { %vm372_vm2 = vmor %vm370_vm0, %vm371_vm15 }
 0x5e2   :  { %v367_v57 = vsub.f32 1.0, %v366_v56 }
 0x5e4   :  { %v368_v59 = vmul.f32 %v534_v55, %v367_v57 }
 0x5e6   :  { %v369_v61 = vadd.f32 %v534_v55, %v368_v59 }
 0x5e8   :  { %v373_v62 = vsel %vm372_vm2, %v534_v55, %v369_v61 }
 0x5e9   :  { %v378_v8 = vsel %vm375_vm3, %v377_v7, %v373_v62 }
 0x5ea   :  { %383 = vrot.lane.b32.xlu2 %v378_v8, %s568_s19  ;;  %v413_v14 = vsub.f32 1.0, %v378_v8  ;;  %v412_v33 = vmul.f32 %v378_v8, %v323_v47 }
 0x5f2   :  { %416 = vrot.lane.b32.xlu2 %v631_v31, %s572_s22  ;;  %v235_v31 = vstv %s492_s26 }
 0x5f3   :  { %v237_v13 = vmul.f32 %v235_v31, %v656_v12 }
 0x5f5   :  { %v238_v19 = vadd.f32 %v237_v13, %v145_v16 }
 0x5f7   :  { %v330_v21 = vadd.f32 %v329_v17, %v238_v19 }
 0x644   :  { %v384_v63 = vpop.permute.xlu2 %383 }
 0x645   :  { %v386_v0 = vmul.f32 %v384_v63, %v323_v47 }
 0x647   :  { %486 = vmatmul.msk.f32.vlgmr.msra.gmra.mxu0 %vm53_vm6, %v386_v0 }
 0x64c   :  { %v417_v1 = vpop.permute.xlu2 %416 }
 0x64d   :  { %495 = vpush %v417_v1 }
 0x67e   :  { %s496_s28 = spop %495 }
 0x67f   :  { %v419_v35 = vstv %s496_s28 }
 0x6c4   :  { %v407_v9 = vpop.f32.mrf.mxu0 }
 0x6c5   :  { %v410_v10 = vadd.f32 %v407_v9, %v381_v4 }
 0x6c7   :  { %535 = vtanh.f32 %v410_v10 }
 0x6cd   :  { %v536_v15 = vpop.eup %535 }
 0x6ce   :  { %v414_v18 = vmul.f32 %v536_v15, %v413_v14 }
 0x6d0   :  { %v415_v20 = vadd.f32 %v414_v18, %v412_v33 }
 0x6d2   :  { %v421_v22 = vmul.f32 %v419_v35, %v415_v20 }
 0x6d4   :  { %v422_v23 = vadd.f32 %v421_v22, %v330_v21 }
 0x6d6   :  { %488 = vmatmul.msk.f32.vlgmr.msra.gmra.mxu1 %vm53_vm6, %v422_v23 }
 0x753   :  { %v447_v42 = vpop.f32.mrf.mxu1 }
 0x754   :  { %v448_v12 = vadd.f32 %v447_v42, %v423_v24 }
 0x756   :  { %450 = vst [vmem:[#allocation2] sm:$0xff] %v448_v12 }
 0x757   :  { %461 = dma.vmem_to_hbm [thread:$0]  %s457_s29, 128, %s459_s5, [#allocation3]  }
 0x758   :  { %561 = dma.done.wait [#allocation3], 128  }
 0x759   :  { %562 = vsyncadd [#allocation3], 4294967168 }
 0x75a   :  { %466 = vsyncpa [#allocation3], 1 }

</bundles_post_ra>
